<compile_context>
chip_gen: v7x
topology: tpu7x:2x2x1
jax: 0.10.0
libtpu: 0.0.40
codegen_flags: <defaults>
</compile_context>

<pallas_src>
import functools

import jax
import jax.numpy as jnp
from jax.experimental import pallas as pl
from jax.experimental.pallas import tpu as pltpu

_LANE = 128        # lane width: pad the vocab (last) dim to a multiple of this
_SUBLANE = 8       # sublane granularity for f32/int32 tiles
_MAX_TILE_N = 1024 # rows per grid step at large N (multiple of 256, ~86% HBM roofline)
_NEG = -1e30       # finite "-inf": exp(_NEG - m) underflows to exactly 0 in f32


def _round_up(x, m):
    return (x + m - 1) // m * m


def _choose_tile_n(n):
    """Rows per grid step.  Small N -> one single grid step (round up to the
    sublane granularity); large N -> 1024-row tiles (mem-bound sweet spot,
    per-step overhead amortized, still only ~0.5 MiB of f32 logits/tile)."""
    return min(_round_up(n, _SUBLANE), _MAX_TILE_N)


def _bigram_ce_kernel(tok_ref, table_ref, logits_ref, partial_ref, *,
                      n_real, v_real, tile_n):
    """One N-tile: embedding lookup (one-hot @ table on the MXU) plus a
    masked cross-entropy partial sum written to this tile's own output block
    (no cross-step accumulator => grid axis stays 'parallel')."""
    i = pl.program_id(0)

    tok = tok_ref[...]            # (tile_n, 2) int32 : [:,0]=index, [:,1]=target
    idx = tok[:, 0:1]             # (tile_n, 1)
    tgt = tok[:, 1:2]             # (tile_n, 1)
    table = table_ref[...]        # (Vp, Vp) f32, vocab zero-padded
    vp = table.shape[0]

    col = jax.lax.broadcasted_iota(jnp.int32, (tile_n, vp), 1)

    # Embedding lookup: exact row copy via one-hot matmul on the MXU.
    onehot = (col == idx).astype(jnp.float32)
    logits = jnp.dot(onehot, table, preferred_element_type=jnp.float32)
    logits_ref[...] = logits      # lane-dense (tile_n, Vp) store

    # Cross entropy over the real vocab columns only (padded lanes -> -inf).
    masked = jnp.where(col < v_real, logits, _NEG)
    m = jnp.max(masked, axis=-1, keepdims=True)
    lse = m + jnp.log(jnp.sum(jnp.exp(masked - m), axis=-1, keepdims=True))
    tgt_onehot = (col == tgt).astype(jnp.float32)
    tgt_logit = jnp.sum(logits * tgt_onehot, axis=-1, keepdims=True)
    nll = lse - tgt_logit         # (tile_n, 1)

    # Rows past the real batch (N padding) contribute nothing to the loss.
    row = i * tile_n + jax.lax.broadcasted_iota(jnp.int32, (tile_n, 1), 0)
    tile_sum = jnp.sum(jnp.where(row < n_real, nll, 0.0))

    # Per-tile partial sum, broadcast over this tile's private (8,128) block
    # (full-vreg unmasked store); wrapper reads element [0,0] of each tile.
    partial_ref[...] = jnp.broadcast_to(tile_sum, (_SUBLANE, _LANE))


def _bigram_lookup_kernel(idx_ref, table_ref, logits_ref):
    """Lookup-only path (targets=None): skips all cross-entropy work."""
    idx = idx_ref[...]            # (tile_n, 1) int32
    table = table_ref[...]        # (Vp, Vp) f32
    tile_n = idx.shape[0]
    vp = table.shape[0]
    col = jax.lax.broadcasted_iota(jnp.int32, (tile_n, vp), 1)
    onehot = (col == idx).astype(jnp.float32)
    logits_ref[...] = jnp.dot(onehot, table,
                              preferred_element_type=jnp.float32)


@functools.partial(jax.jit, static_argnames=("n_real", "v_real", "tile_n"))
def _bigram_ce_call(tok_p, table_p, *, n_real, v_real, tile_n):
    n_pad = tok_p.shape[0]
    vp = table_p.shape[0]
    num_tiles = n_pad // tile_n
    kernel = functools.partial(_bigram_ce_kernel, n_real=n_real,
                               v_real=v_real, tile_n=tile_n)
    logits, partials = pl.pallas_call(
        kernel,
        out_shape=(
            jax.ShapeDtypeStruct((n_pad, vp), jnp.float32),
            jax.ShapeDtypeStruct((num_tiles * _SUBLANE, _LANE), jnp.float32),
        ),
        grid=(num_tiles,),
        in_specs=[
            pl.BlockSpec((tile_n, 2), lambda i: (i, 0)),     # packed idx/tgt
            pl.BlockSpec((vp, vp), lambda i: (0, 0)),        # resident table
        ],
        out_specs=(
            pl.BlockSpec((tile_n, vp), lambda i: (i, 0)),    # lane-dense logits
            pl.BlockSpec((_SUBLANE, _LANE), lambda i: (i, 0)),  # per-tile partial
        ),
        compiler_params=pltpu.CompilerParams(
            dimension_semantics=("parallel",),   # no accumulator -> megacore OK
            vmem_limit_bytes=32 * 1024 * 1024,
        ),
    )(tok_p, table_p)
    # Tiny wrapper-side reduction over one scalar per tile.
    loss = jnp.sum(partials[0::_SUBLANE, 0]) / jnp.float32(n_real)
    return logits, loss


@functools.partial(jax.jit, static_argnames=("tile_n",))
def _bigram_lookup_call(idx_p, table_p, *, tile_n):
    n_pad = idx_p.shape[0]
    vp = table_p.shape[0]
    num_tiles = n_pad // tile_n
    return pl.pallas_call(
        _bigram_lookup_kernel,
        out_shape=jax.ShapeDtypeStruct((n_pad, vp), jnp.float32),
        grid=(num_tiles,),
        in_specs=[
            pl.BlockSpec((tile_n, 1), lambda i: (i, 0)),
            pl.BlockSpec((vp, vp), lambda i: (0, 0)),
        ],
        out_specs=pl.BlockSpec((tile_n, vp), lambda i: (i, 0)),
        compiler_params=pltpu.CompilerParams(
            dimension_semantics=("parallel",),
            vmem_limit_bytes=32 * 1024 * 1024,
        ),
    )(idx_p, table_p)


class BigramPallas:
    """JAX/Pallas equivalent of the PyTorch `Bigram` module's forward()."""

    def __init__(self, vocab_size, key):
        self.vocab_size = vocab_size
        # nn.Embedding default init ~ N(0, 1)
        self.table = jax.random.normal(
            key, (vocab_size, vocab_size), dtype=jnp.float32)
        vp = _round_up(vocab_size, _LANE)
        self._vp = vp
        # Lane-pad the table once; padded rows/cols are zero and padded
        # columns are masked out of the softmax inside the kernel.
        self._table_padded = jnp.pad(
            self.table, ((0, vp - vocab_size), (0, vp - vocab_size)))

    @staticmethod
    def _pad_flat(tokens, n_pad):
        flat = tokens.reshape(-1).astype(jnp.int32)
        return jnp.pad(flat, (0, n_pad - flat.shape[0]))

    def forward(self, index, targets=None, pad_outputs=False):
        """pad_outputs=True returns the lane/row-padded (n_pad, 128) logits
        directly and skips the extra full-HBM-pass [:n, :v] re-copy (the
        mem-bound fast path); default False matches the PyTorch shapes."""
        b, t = index.shape
        n = b * t
        v = self.vocab_size
        tile_n = _choose_tile_n(n)
        n_pad = _round_up(n, tile_n)
        idx_flat = self._pad_flat(index, n_pad)

        if targets is None:
            logits_p = _bigram_lookup_call(
                idx_flat.reshape(n_pad, 1), self._table_padded, tile_n=tile_n)
            if pad_outputs:
                return logits_p, None
            return logits_p[:n, :v].reshape(b, t, v), None

        tgt_flat = self._pad_flat(targets, n_pad)
        tok_p = jnp.stack([idx_flat, tgt_flat], axis=-1)   # (n_pad, 2) int32
        logits_p, loss = _bigram_ce_call(
            tok_p, self._table_padded, n_real=n, v_real=v, tile_n=tile_n)
        if pad_outputs:
            return logits_p, loss
        # torch path returns logits already reshaped to (B*T, C) when
        # targets are supplied.
        return logits_p[:n, :v], loss

    # TODO(synk): generate() (torch.multinomial sampling loop) stays a
    # host-side autoregressive loop; no single-kernel equivalent here.


if __name__ == "__main__":
    key = jax.random.PRNGKey(0)
    k_tab, k_idx, k_tgt = jax.random.split(key, 3)

    vocab_size = 65   # e.g. tiny-shakespeare character vocab
    B, T = 2, 8

    model = BigramPallas(vocab_size, k_tab)

    index = jax.random.randint(k_idx, (B, T), 0, vocab_size, dtype=jnp.int32)
    targets = jax.random.randint(k_tgt, (B, T), 0, vocab_size, dtype=jnp.int32)

    # with targets: (B*T, V) logits + scalar loss
    logits, loss = model.forward(index, targets)
    jax.block_until_ready((logits, loss))

    # without targets: (B, T, V) logits, loss is None
    logits_nt, loss_nt = model.forward(index, None)
    jax.block_until_ready(logits_nt)

    # padded fast path (no post-kernel slice)
    logits_pad, loss_pad = model.forward(index, targets, pad_outputs=True)
    jax.block_until_ready((logits_pad, loss_pad))

    # lightweight sanity check against a pure-JAX reference
    ref_logits = model.table[index.reshape(-1)]
    ref_lse = jax.nn.logsumexp(ref_logits, axis=-1)
    ref_tgt = jnp.take_along_axis(
        ref_logits, targets.reshape(-1, 1), axis=-1)[:, 0]
    ref_loss = jnp.mean(ref_lse - ref_tgt)

    N = B * T
    assert logits.shape == (N, vocab_size)
    assert logits_nt.shape == (B, T, vocab_size)
    assert loss_nt is None
    assert jnp.allclose(logits, ref_logits, atol=1e-5)
    assert jnp.allclose(logits_nt.reshape(N, vocab_size), ref_logits, atol=1e-5)
    assert jnp.allclose(logits_pad[:N, :vocab_size], ref_logits, atol=1e-5)
    assert jnp.allclose(loss, ref_loss, atol=1e-5)
    assert jnp.allclose(loss_pad, ref_loss, atol=1e-5)

    # second check at a larger N to exercise the multi-tile "parallel" grid
    # and the per-tile partial-sum loss reduction (N=2048 -> 2 tiles of 1024)
    B2, T2 = 4, 512
    idx2 = jax.random.randint(k_idx, (B2, T2), 0, vocab_size, dtype=jnp.int32)
    tgt2 = jax.random.randint(k_tgt, (B2, T2), 0, vocab_size, dtype=jnp.int32)
    logits2, loss2 = model.forward(idx2, tgt2)
    jax.block_until_ready((logits2, loss2))

    ref_logits2 = model.table[idx2.reshape(-1)]
    ref_lse2 = jax.nn.logsumexp(ref_logits2, axis=-1)
    ref_tgt2 = jnp.take_along_axis(
        ref_logits2, tgt2.reshape(-1, 1), axis=-1)[:, 0]
    ref_loss2 = jnp.mean(ref_lse2 - ref_tgt2)

    assert logits2.shape == (B2 * T2, vocab_size)
    assert jnp.allclose(logits2, ref_logits2, atol=1e-5)
    assert jnp.allclose(loss2, ref_loss2, atol=1e-4)

    print("KERNEL_OK")
</pallas_src>

<mosaic_0001>
module attributes {stable_mosaic.version = 11 : i64} {
  func.func @_bigram_ce_kernel(%arg0: i32, %arg1: memref<16x2xi32, #tpu.memory_space<vmem>>, %arg2: memref<128x128xf32, #tpu.memory_space<vmem>>, %arg3: memref<16x128xf32, #tpu.memory_space<vmem>>, %arg4: memref<8x128xf32, #tpu.memory_space<vmem>>) attributes {dimension_semantics = [#tpu.dimension_semantics<parallel>], iteration_bounds = array<i64: 1>, scalar_prefetch = 0 : i64, scratch_operands = 0 : i64, tpu.core_type = #tpu.core_type<tc>, window_params = [{transform_indices = @transform_0, window_bounds = array<i64: 16, 2>}, {pipeline_mode = #tpu.pipeline_mode<synchronous>, transform_indices = @transform_1, window_bounds = array<i64: 128, 128>}, {transform_indices = @transform_2, window_bounds = array<i64: 16, 128>}, {transform_indices = @transform_3, window_bounds = array<i64: 8, 128>}]} {
    %c0 = arith.constant 0 : index
    %c0_0 = arith.constant 0 : index
    %0 = vector.load %arg1[%c0, %c0_0] : memref<16x2xi32, #tpu.memory_space<vmem>>, vector<16x2xi32>
    %1 = vector.extract_strided_slice %0 {offsets = [0, 0], sizes = [16, 1], strides = [1, 1]} : vector<16x2xi32> to vector<16x1xi32>
    %2 = vector.extract_strided_slice %0 {offsets = [0, 1], sizes = [16, 1], strides = [1, 1]} : vector<16x2xi32> to vector<16x1xi32>
    %c0_1 = arith.constant 0 : index
    %c0_2 = arith.constant 0 : index
    %3 = vector.load %arg2[%c0_1, %c0_2] : memref<128x128xf32, #tpu.memory_space<vmem>>, vector<128x128xf32>
    %4 = tpu.iota {dimensions = array<i32: 1>} : vector<16x128xi32>
    %5 = vector.broadcast %1 : vector<16x1xi32> to vector<16x128xi32>
    %6 = arith.cmpi eq, %4, %5 : vector<16x128xi32>
    %7 = arith.extui %6 : vector<16x128xi1> to vector<16x128xi32>
    %8 = arith.sitofp %7 : vector<16x128xi32> to vector<16x128xf32>
    %cst = arith.constant dense<0.000000e+00> : vector<16x128xf32>
    %9 = tpu.matmul %8, %3, %cst {dimension_numbers = #tpu.dot_dimension_numbers<[1], [0], [0], [1], [0, 0, 1, 1], [], []>} : vector<16x128xf32>, vector<128x128xf32>, vector<16x128xf32> -> vector<16x128xf32>
    %c0_3 = arith.constant 0 : index
    %c0_4 = arith.constant 0 : index
    %10 = vector.load %arg3[%c0_3, %c0_4] : memref<16x128xf32, #tpu.memory_space<vmem>>, vector<16x128xf32>
    tpu.vector_store %arg3[%c0_3, %c0_4], %9 {strides = array<i32>} : memref<16x128xf32, #tpu.memory_space<vmem>>, vector<16x128xf32>,
    %c65_i32 = arith.constant 65 : i32
    %11 = vector.broadcast %c65_i32 : i32 to vector<16x128xi32>
    %12 = arith.cmpi slt, %4, %11 : vector<16x128xi32>
    %cst_5 = arith.constant -1.000000e+30 : f32
    %13 = vector.broadcast %cst_5 : f32 to vector<16x128xf32>
    %14 = arith.select %12, %9, %13 : vector<16x128xi1>, vector<16x128xf32>
    %cst_6 = arith.constant dense<0xFF800000> : vector<16xf32>
    %15 = vector.multi_reduction <maximumf>, %14, %cst_6 [1] : vector<16x128xf32> to vector<16xf32>
    %16 = vector.shape_cast %15 : vector<16xf32> to vector<16x1xf32>
    %17 = vector.broadcast %16 : vector<16x1xf32> to vector<16x128xf32>
    %18 = arith.subf %14, %17 : vector<16x128xf32>
    %19 = math.exp %18 : vector<16x128xf32>
    %cst_7 = arith.constant dense<0.000000e+00> : vector<16xf32>
    %20 = vector.multi_reduction <add>, %19, %cst_7 [1] : vector<16x128xf32> to vector<16xf32>
    %21 = vector.shape_cast %20 : vector<16xf32> to vector<16x1xf32>
    %22 = math.log %21 : vector<16x1xf32>
    %23 = arith.addf %16, %22 : vector<16x1xf32>
    %24 = vector.broadcast %2 : vector<16x1xi32> to vector<16x128xi32>
    %25 = arith.cmpi eq, %4, %24 : vector<16x128xi32>
    %26 = arith.extui %25 : vector<16x128xi1> to vector<16x128xi32>
    %27 = arith.sitofp %26 : vector<16x128xi32> to vector<16x128xf32>
    %28 = arith.mulf %9, %27 : vector<16x128xf32>
    %cst_8 = arith.constant dense<0.000000e+00> : vector<16xf32>
    %29 = vector.multi_reduction <add>, %28, %cst_8 [1] : vector<16x128xf32> to vector<16xf32>
    %30 = vector.shape_cast %29 : vector<16xf32> to vector<16x1xf32>
    %31 = arith.subf %23, %30 : vector<16x1xf32>
    %c16_i32 = arith.constant 16 : i32
    %32 = arith.muli %arg0, %c16_i32 : i32
    %33 = tpu.iota {dimensions = array<i32: 0>} : vector<16x1xi32>
    %34 = vector.broadcast %32 : i32 to vector<16x1xi32>
    %35 = arith.addi %34, %33 : vector<16x1xi32>
    %c16_i32_9 = arith.constant 16 : i32
    %36 = vector.broadcast %c16_i32_9 : i32 to vector<16x1xi32>
    %37 = arith.cmpi slt, %35, %36 : vector<16x1xi32>
    %cst_10 = arith.constant 0.000000e+00 : f32
    %38 = vector.broadcast %cst_10 : f32 to vector<16x1xf32>
    %39 = arith.select %37, %31, %38 : vector<16x1xi1>, vector<16x1xf32>
    %40 = vector.shape_cast %39 : vector<16x1xf32> to vector<1x16x1xf32>
    %cst_11 = arith.constant dense<0.000000e+00> : vector<1xf32>
    %41 = vector.multi_reduction <add>, %40, %cst_11 [1, 2] : vector<1x16x1xf32> to vector<1xf32>
    %42 = vector.shape_cast %41 : vector<1xf32> to vector<1x1x1xf32>
    %43 = vector.extract %42[0, 0, 0] : f32 from vector<1x1x1xf32>
    %44 = vector.broadcast %43 : f32 to vector<8x128xf32>
    %c0_12 = arith.constant 0 : index
    %c0_13 = arith.constant 0 : index
    %45 = vector.load %arg4[%c0_12, %c0_13] : memref<8x128xf32, #tpu.memory_space<vmem>>, vector<8x128xf32>
    tpu.vector_store %arg4[%c0_12, %c0_13], %44 {strides = array<i32>} : memref<8x128xf32, #tpu.memory_space<vmem>>, vector<8x128xf32>,
    return
  }
  func.func @transform_0(%arg0: i32) -> (i32, i32) {
    %c0_i32 = arith.constant 0 : i32
    %c0_i32_0 = arith.constant 0 : i32
    return %arg0, %c0_i32 : i32, i32
  }
  func.func @transform_1(%arg0: i32) -> (i32, i32) {
    %c0_i32 = arith.constant 0 : i32
    %c0_i32_0 = arith.constant 0 : i32
    %c0_i32_1 = arith.constant 0 : i32
    return %c0_i32, %c0_i32_0 : i32, i32
  }
  func.func @transform_2(%arg0: i32) -> (i32, i32) {
    %c0_i32 = arith.constant 0 : i32
    %c0_i32_0 = arith.constant 0 : i32
    return %arg0, %c0_i32 : i32, i32
  }
  func.func @transform_3(%arg0: i32) -> (i32, i32) {
    %c0_i32 = arith.constant 0 : i32
    %c0_i32_0 = arith.constant 0 : i32
    return %arg0, %c0_i32 : i32, i32
  }
}

</mosaic_0001>

<bundles_post_ra>
// kernel: _bigram_ce_call.1
= control target key start
LH: loop header
LB: loop body
LE: loop exit
PB: predicated region body
PF: predicated region fallthrough
CT: control target
= control target key end

     0   :  { %9 = vsyncpa [#allocation3], 0  ;;  %s454_s0 = inlined_call_operand.vmem [shape: s32[16,2], index: 0, kind: input, shape index: {}]   ;;  %s455_s1 = inlined_call_operand.hbm [shape: f32[128,128], index: 1, kind: input, shape index: {}]   ;;  %s456_s2 = inlined_call_operand.hbm [shape: f32[16,128], index: 2, kind: output, shape index: {0}]   ;;  %s457_s3 = inlined_call_operand.vmem [shape: f32[8,128], index: 3, kind: output, shape index: {1}]  }
   0x1   :  { %10 = vsyncpa [#allocation4], 0  ;;  %s387_s12 = smov [#allocation2]   ;;  %s339_s16 = scalar_lea.hbm %s455_s1, 2048 }
   0x2   :  { %s18_s13 = sshll.u32 %s387_s12, 4  ;;  %p340_p0 = scmp.ne.s32.totalorder %s455_s1, %s339_s16  ;;  %s19_s13 = int_to_ptr.vmem [resolvable:$true] %s18_s13 }
   0x3   :  { %p343_p1 = scmp.lt.u32.totalorder %s339_s16, %s455_s1 }
   0x5   :  { %p345_p2 = pnand %p343_p1, %p340_p0 }
   0x7   :  { %348 = shalt.err (!%p345_p2)
}
   0x8   :  { %s349_s21 = scalar_lea.vmem %s19_s13, 2048  ;;  %p354_p4 = scmp.lt.s32.totalorder %s19_s13, %s19_s13 }
   0x9   :  { %p350_p3 = scmp.ne.s32.totalorder %s19_s13, %s349_s21  ;;  %p355_p5 = scmp.lt.s32.totalorder %s349_s21, %s349_s21 }
   0xb   :  { %p356_p6 = por %p355_p5, %p354_p4 }
   0xd   :  { %p357_p7 = pnand %p356_p6, %p350_p3 }
   0xf   :  { %360 = shalt.err (!%p357_p7)
}
  0x10   :  { %s388_s22 = smov 128   ;;  %s389_s23 = smov 8  }
  0x11   :  { %24 = dma.hbm_to_vmem [thread:$0]  %s455_s1, 2048, %s19_s13, [#allocation3], %s388_s22, %s388_s22, %s389_s23  }
  0x12   :  { %383 = dma.done.wait [#allocation3], 2048  }
  0x13   :  { %384 = vsyncadd [#allocation3], 4294965248  ;;  %v390_v0 = vmov 0   ;;  %v28_v1 = vld [vmem:[%s454_s0] sm:$0xff]  ;;  %v31_v3 = vld [vmem:[#allocation2 + $0x8] sm:$0xff]  ;;  %v391_v14 = vmov 1   ;;  %v46_v28 = vlaneseq }
  0x14   :  { %328 = vset.pattern.permute.xlu0 %v390_v0  ;;  %v30_v2 = vld [vmem:[#allocation2] sm:$0xff]  ;;  %v32_v4 = vld [vmem:[#allocation2 + $0x10] sm:$0xff]  ;;  %v33_v5 = vld [vmem:[#allocation2 + $0x18] sm:$0xff]  ;;  %330 = vset.pattern.permute.xlu1 %v391_v14  ;;  %v392_v31 = vmov 1.0   ;;  %v393_v47 = vmov 0.0   ;;  %vm191_vm5 = vcmask 7168  }
  0x15   :  { %49 = vperm.xlu0 %328, %v28_v1   ;;  %v29_v6 = vld [vmem:[%s454_s0 + $0x8] sm:$0xff]  ;;  %v286_v7 = vpack.c.bf16 %v31_v3, %v30_v2  ;;  %v290_v8 = vpack.c.bf16 %v33_v5, %v32_v4  ;;  %v34_v9 = vld [vmem:[#allocation2 + $0x20] sm:$0xff]  ;;  %v36_v12 = vld [vmem:[#allocation2 + $0x30] sm:$0xff]  ;;  %v47_v29 = vand.u32 127, %v46_v28  ;;  %s394_s0 = smov [#allocation5]  }
  0x16   :  { %v35_v10 = vld [vmem:[#allocation2 + $0x28] sm:$0xff]  ;;  %v37_v13 = vld [vmem:[#allocation2 + $0x38] sm:$0xff]  ;;  %v38_v16 = vld [vmem:[#allocation2 + $0x40] sm:$0xff]  ;;  %s211_s1 = sshll.u32 %s394_s0, 4  ;;  %s212_s1 = int_to_ptr.vmem [resolvable:$true] %s211_s1 }
  0x17   :  { %287 = vmatprep.subr.bf16.mxu0 %v286_v7  ;;  %v294_v11 = vpack.c.bf16 %v35_v10, %v34_v9  ;;  %v298_v15 = vpack.c.bf16 %v37_v13, %v36_v12  ;;  %v39_v17 = vld [vmem:[#allocation2 + $0x48] sm:$0xff]  ;;  %v40_v19 = vld [vmem:[#allocation2 + $0x50] sm:$0xff]  ;;  %v41_v20 = vld [vmem:[#allocation2 + $0x58] sm:$0xff]  ;;  %vm137_vm2 = vcmp.lt.s32.totalorder %v47_v29, 65  ;;  %s361_s30 = scalar_lea.vmem %s212_s1, 256  ;;  %p366_p9 = scmp.lt.s32.totalorder %s212_s1, %s212_s1 }
  0x18   :  { %289 = vmatpush3.bf16.msra.mxu0 %v286_v7  ;;  %v302_v18 = vpack.c.bf16 %v39_v17, %v38_v16  ;;  %v306_v21 = vpack.c.bf16 %v41_v20, %v40_v19  ;;  %v42_v22 = vld [vmem:[#allocation2 + $0x60] sm:$0xff]  ;;  %v43_v23 = vld [vmem:[#allocation2 + $0x68] sm:$0xff]  ;;  %v44_v25 = vld [vmem:[#allocation2 + $0x70] sm:$0xff]  ;;  %p362_p8 = scmp.ne.s32.totalorder %s212_s1, %s361_s30  ;;  %p367_p10 = scmp.lt.s32.totalorder %s361_s30, %s361_s30 }
  0x19   :  { %52 = vperm.xlu0 %328, %v29_v6   ;;  %291 = vmatprep.subr.bf16.mxu0 %v290_v8  ;;  %v310_v24 = vpack.c.bf16 %v43_v23, %v42_v22  ;;  %v45_v26 = vld [vmem:[#allocation2 + $0x78] sm:$0xff] }
  0x1a   :  { %v314_v27 = vpack.c.bf16 %v45_v26, %v44_v25  ;;  %p368_p11 = por %p367_p10, %p366_p9 }
  0x1c   :  { %293 = vmatpush3.bf16.msra.mxu0 %v290_v8  ;;  %p369_p12 = pnand %p368_p11, %p362_p8 }
  0x1d   :  { %329 = vset.pattern.permute.xlu0 %v391_v14  ;;  %295 = vmatprep.subr.bf16.mxu0 %v294_v11 }
  0x1e   :  { %161 = vperm.xlu0 %329, %v28_v1  }
  0x20   :  { %297 = vmatpush3.bf16.msra.mxu0 %v294_v11 }
  0x21   :  { %299 = vmatprep.subr.bf16.mxu0 %v298_v15 }
  0x24   :  { %301 = vmatpush3.bf16.msra.mxu0 %v298_v15 }
  0x25   :  { %303 = vmatprep.subr.bf16.mxu0 %v302_v18 }
  0x28   :  { %305 = vmatpush3.bf16.msra.mxu0 %v302_v18 }
  0x29   :  { %307 = vmatprep.subr.bf16.mxu0 %v306_v21 }
  0x2c   :  { %309 = vmatpush3.bf16.msra.mxu0 %v306_v21 }
  0x2d   :  { %311 = vmatprep.subr.bf16.mxu0 %v310_v24 }
  0x30   :  { %313 = vmatpush3.bf16.msra.mxu0 %v310_v24 }
  0x31   :  { %315 = vmatprep.subr.bf16.mxu0 %v314_v27 }
  0x34   :  { %317 = vmatpush3.bf16.msra.mxu0 %v314_v27 }
  0x94   :  { %v50_v30 = vpop.permute.xlu0 %49 }
  0x95   :  { %vm54_vm0 = vcmp.eq.s32.totalorder %v47_v29, %v50_v30 }
  0x96   :  { %283 = vmatprep.mubr.msk.f32.mxu0 %vm54_vm0, %v392_v31 }
  0x98   :  { %v53_v32 = vpop.permute.xlu0 %52 }
  0x99   :  { %vm55_vm1 = vcmp.eq.s32.totalorder %v47_v29, %v53_v32 }
  0x9a   :  { %284 = vmatmul.mubr.msk.f32.vlgmr.msra.gmra.mrb[0].mxu0 %vm55_vm1, %v392_v31 }
  0x9d   :  { %v162_v43 = vpop.permute.xlu0 %161 }
  0x9e   :  { %vm166_vm3 = vcmp.eq.s32.totalorder %v47_v29, %v162_v43 }
  0x9f   :  { %v231_v48 = vsel %vm166_vm3, 1.0, %v393_v47 }
 0x16d   :  { %v285_v33 = vpop.f32.mrb[0].mxu0 }
 0x16e   :  { %136 = vst [vmem:[#allocation5 + $0x8] sm:$0xff] %v285_v33  ;;  %v126_v34 = vpop.f32.mrb[1].mxu0  ;;  %v139_v35 = vsel %vm137_vm2, %v285_v33, -1e+30 }
 0x16f   :  { %135 = vst [vmem:[#allocation5] sm:$0xff] %v126_v34  ;;  %142 = vmax.xlane.f32.xlu1 %v139_v35  ;;  %v138_v36 = vsel %vm137_vm2, %v126_v34, -1e+30  ;;  %v172_v49 = vmul.f32 %v231_v48, %v126_v34 }
 0x173   :  { %140 = vmax.xlane.f32.xlu1 %v138_v36 }
 0x184   :  { %164 = vperm.xlu1 %330, %v29_v6  }
 0x1fc   :  { %v143_v37 = vpop.xlane.xlu1 %142 }
 0x1fd   :  { %v145_v38 = vsub.f32 %v139_v35, %v143_v37 }
 0x1ff   :  { %v148_v39 = vmul.f32 1.442695, %v145_v38 }
 0x200   :  { %v141_v40 = vpop.xlane.xlu1 %140 }
 0x201   :  { %331 = vpow2.f32 %v148_v39  ;;  %v144_v41 = vsub.f32 %v138_v36, %v141_v40 }
 0x203   :  { %v146_v42 = vmul.f32 1.442695, %v144_v41 }
 0x204   :  { %v165_v45 = vpop.permute.xlu1 %164 }
 0x205   :  { %333 = vpow2.f32 %v146_v42  ;;  %vm167_vm4 = vcmp.eq.s32.totalorder %v47_v29, %v165_v45 }
 0x206   :  { %v232_v50 = vsel %vm167_vm4, 1.0, %v393_v47 }
 0x207   :  { %v173_v51 = vmul.f32 %v285_v33, %v232_v50 }
 0x20b   :  { %v332_v44 = vpop.eup %331 }
 0x20c   :  { %152 = vadd.xlane.f32.xlu1 %v332_v44 }
 0x20f   :  { %v334_v46 = vpop.eup %333 }
 0x210   :  { %150 = vadd.xlane.f32.xlu0 %v334_v46 }
 0x214   :  { %174 = vadd.xlane.f32.xlu0 %v172_v49 }
 0x218   :  { %176 = vadd.xlane.f32.xlu0 %v173_v51 }
 0x299   :  { %v153_v52 = vpop.xlane.xlu1 %152 }
 0x29a   :  { %335 = vlog2.f32 %v153_v52 }
 0x29d   :  { %v151_v53 = vpop.xlane.xlu0 %150 }
 0x29e   :  { %337 = vlog2.f32 %v151_v53 }
 0x2a1   :  { %v175_v55 = vpop.xlane.xlu0 %174 }
 0x2a4   :  { %v336_v54 = vpop.eup %335 }
 0x2a5   :  { %v157_v56 = vmul.f32 0.6931472, %v336_v54  ;;  %v177_v60 = vpop.xlane.xlu0 %176 }
 0x2a7   :  { %v159_v57 = vadd.f32 %v157_v56, %v143_v37 }
 0x2a8   :  { %v338_v58 = vpop.eup %337 }
 0x2a9   :  { %v155_v59 = vmul.f32 0.6931472, %v338_v58  ;;  %v179_v62 = vsub.f32 %v159_v57, %v177_v60 }
 0x2ab   :  { %v158_v61 = vadd.f32 %v155_v59, %v141_v40  ;;  %v193_v1 = vsel %vm191_vm5, %v179_v62, 0.0 }
 0x2ad   :  { %v178_v63 = vsub.f32 %v158_v61, %v175_v55 }
 0x2af   :  { %v192_v0 = vsel %vm191_vm5, %v178_v63, 0.0 }
 0x2b0   :  { %v194_v2 = vadd.f32 %v193_v1, %v192_v0 }
 0x2b2   :  { %195 = vadd.xlane.f32.xlu0 %v194_v2 }
 0x2b3   :  { %372 = shalt.err (!%p369_p12)
}
 0x2b4   :  { %s373_s6 = scalar_lea.hbm %s456_s2, 256 }
 0x2b5   :  { %p374_p13 = scmp.ne.s32.totalorder %s456_s2, %s373_s6  ;;  %p377_p0 = scmp.lt.u32.totalorder %s373_s6, %s456_s2 }
 0x2b7   :  { %p379_p1 = pnand %p377_p0, %p374_p13 }
 0x2b9   :  { %382 = shalt.err (!%p379_p1)
}
 0x2ba   :  { %217 = dma.vmem_to_hbm [thread:$0]  %s212_s1, 256, %s456_s2, [#allocation4], %s388_s22, %s388_s22, %s389_s23  }
 0x33f   :  { %v196_v3 = vpop.xlane.xlu0 %195 }
 0x340   :  { %v197_v4 = vrot.slane %v196_v3, 4 }
 0x342   :  { %v198_v5 = vadd.f32 %v197_v4, %v196_v3 }
 0x344   :  { %v199_v6 = vrot.slane %v198_v5, 2 }
 0x346   :  { %v200_v7 = vadd.f32 %v199_v6, %v198_v5 }
 0x348   :  { %v201_v8 = vrot.slane %v200_v7, 1 }
 0x34a   :  { %v202_v9 = vadd.f32 %v201_v8, %v200_v7 }
 0x34c   :  { %318 = vpush %v202_v9 }
 0x37d   :  { %s319_s13 = spop %318 }
 0x37e   :  { %v204_v10 = vstv %s319_s13 }
 0x37f   :  { %205 = vst [vmem:[%s457_s3] sm:$0xff] %v204_v10 }
 0x380   :  { %385 = dma.done.wait [#allocation4], 256  }
 0x381   :  { %386 = vsyncadd [#allocation4], 4294967040 }
 0x382   :  { %225 = vsyncpa [#allocation3], 1 }
 0x383   :  { %226 = vsyncpa [#allocation4], 1 }

</bundles_post_ra>
